<compile_context>
chip_gen: v6e
topology: v6e:2x2x1
jax: 0.10.0
libtpu: 0.0.40
codegen_flags: <defaults>
</compile_context>

<pallas_src>
import jax
import jax.numpy as jnp
from jax.experimental import pallas as pl
from jax.experimental.pallas import tpu as pltpu


def embed_test_kernel(w_ref, x_ref, o_ref):
    # w_ref: (4, 2) f32 VMEM  -- rows 0-1 = W[0].view(2,2), rows 2-3 = W[1].view(2,2)
    # x_ref: (1, 2) f32 VMEM  -- the input vector x
    # o_ref: (2, 2) f32 VMEM
    x = x_ref[...]                                   # (1, 2)
    s = jnp.sum(x)                                   # 2-element lane reduce (XLU)
    # Vector select between the two already-resident (2,2) views (1 VALU op);
    # strict > 0 matches the torch branch (sum == 0 -> row 1).
    vec = jnp.where(s > 0.0, w_ref[0:2, :], w_ref[2:4, :])   # (2, 2)
    z = vec * x                                      # (2,2) * (1,2) broadcast -> (2,2)
    o_ref[...] = jnp.tanh(jax.nn.sigmoid(z))         # EUP transcendentals, f32


def embed_test_forward(weight, x):
    """weight: (2, 4) float32 embedding table; x: (2,) float32. Returns (2, 2) float32."""
    # Pack both .view([2,2]) candidates into one tile-friendly (4, 2) buffer.
    w4 = weight.astype(jnp.float32).reshape(4, 2)
    x2 = x.astype(jnp.float32).reshape(1, 2)
    return pl.pallas_call(
        embed_test_kernel,
        out_shape=jax.ShapeDtypeStruct((2, 2), jnp.float32),
        in_specs=[
            pl.BlockSpec(memory_space=pltpu.MemorySpace.VMEM),   # w4
            pl.BlockSpec(memory_space=pltpu.MemorySpace.VMEM),   # x2
        ],
        out_specs=pl.BlockSpec(memory_space=pltpu.MemorySpace.VMEM),
    )(w4, x2)


if __name__ == "__main__":
    key = jax.random.PRNGKey(0)
    # nn.Embedding(2, 4) initializes weight ~ N(0, 1); deterministic synthetic init here.
    weight = jax.random.normal(key, (2, 4), dtype=jnp.float32)
    x = jnp.array([1.0, 1.0], dtype=jnp.float32)     # same as torch.Tensor([1, 1])

    out = jax.block_until_ready(embed_test_forward(weight, x))

    # Pure-JAX reference of the same semantics (taken-branch: sum > 0 -> row 0).
    idx = jnp.where(jnp.sum(x) > 0, 0, 1)
    ref = jnp.tanh(jax.nn.sigmoid(weight[idx].reshape(2, 2) * x))
    assert jnp.allclose(out, ref, atol=1e-6, rtol=1e-6), (out, ref)

    # Also exercise the else-branch (sum(x) <= 0 -> row 1).
    x_neg = jnp.array([-1.0, -2.0], dtype=jnp.float32)
    out_neg = jax.block_until_ready(embed_test_forward(weight, x_neg))
    ref_neg = jnp.tanh(jax.nn.sigmoid(weight[1].reshape(2, 2) * x_neg))
    assert jnp.allclose(out_neg, ref_neg, atol=1e-6, rtol=1e-6), (out_neg, ref_neg)

    print("KERNEL_OK")
</pallas_src>

<mosaic_0001>
module attributes {stable_mosaic.version = 11 : i64} {
  func.func @embed_test_kernel(%arg0: memref<4x2xf32, #tpu.memory_space<vmem>>, %arg1: memref<1x2xf32, #tpu.memory_space<vmem>>, %arg2: memref<2x2xf32, #tpu.memory_space<vmem>>) attributes {dimension_semantics = [], scalar_prefetch = 0 : i64, scratch_operands = 0 : i64, tpu.core_type = #tpu.core_type<tc>} {
    %c0 = arith.constant 0 : index
    %c0_0 = arith.constant 0 : index
    %0 = vector.load %arg1[%c0, %c0_0] : memref<1x2xf32, #tpu.memory_space<vmem>>, vector<1x2xf32>
    %1 = vector.shape_cast %0 : vector<1x2xf32> to vector<1x1x2xf32>
    %cst = arith.constant dense<0.000000e+00> : vector<1xf32>
    %2 = vector.multi_reduction <add>, %1, %cst [1, 2] : vector<1x1x2xf32> to vector<1xf32>
    %3 = vector.shape_cast %2 : vector<1xf32> to vector<1x1x1xf32>
    %4 = vector.extract %3[0, 0, 0] : f32 from vector<1x1x1xf32>
    %cst_1 = arith.constant 0.000000e+00 : f32
    %5 = arith.cmpf ogt, %4, %cst_1 : f32
    %c0_2 = arith.constant 0 : index
    %c0_3 = arith.constant 0 : index
    %6 = vector.load %arg0[%c0_2, %c0_3] : memref<4x2xf32, #tpu.memory_space<vmem>>, vector<2x2xf32>
    %c2 = arith.constant 2 : index
    %c0_4 = arith.constant 0 : index
    %7 = vector.load %arg0[%c2, %c0_4] : memref<4x2xf32, #tpu.memory_space<vmem>>, vector<2x2xf32>
    %8 = arith.select %5, %6, %7 : vector<2x2xf32>
    %9 = vector.broadcast %0 : vector<1x2xf32> to vector<2x2xf32>
    %10 = arith.mulf %8, %9 : vector<2x2xf32>
    %11 = arith.negf %10 : vector<2x2xf32>
    %12 = math.exp %11 : vector<2x2xf32>
    %cst_5 = arith.constant 1.000000e+00 : f32
    %13 = vector.broadcast %cst_5 : f32 to vector<2x2xf32>
    %14 = arith.addf %13, %12 : vector<2x2xf32>
    %15 = arith.divf %13, %14 : vector<2x2xf32>
    %16 = math.tanh %15 : vector<2x2xf32>
    %c0_6 = arith.constant 0 : index
    %c0_7 = arith.constant 0 : index
    %17 = vector.load %arg2[%c0_6, %c0_7] : memref<2x2xf32, #tpu.memory_space<vmem>>, vector<2x2xf32>
    tpu.vector_store %arg2[%c0_6, %c0_7], %16 {strides = array<i32>} : memref<2x2xf32, #tpu.memory_space<vmem>>, vector<2x2xf32>,
    return
  }
}

</mosaic_0001>

<bundles_post_ra>
// kernel: tpu_custom_call.1
= control target key start
LH: loop header
LB: loop body
LE: loop exit
PB: predicated region body
PF: predicated region fallthrough
CT: control target
= control target key end

     0   :  { %vm13_vm0 = vcmask 8192   ;;  %s121_s0 = inlined_call_operand.vmem [shape: f32[4,2], index: 0, kind: input, shape index: {}]   ;;  %s122_s1 = inlined_call_operand.vmem [shape: f32[1,2], index: 1, kind: input, shape index: {}]   ;;  %s123_s2 = inlined_call_operand.hbm [shape: f32[2,2], index: 2, kind: output, shape index: {}]  }
   0x1   :  { %v12_v0 = vld [vmem:[%s122_s1] sm:$0x1] }
   0x2   :  { %7 = vsyncpa [#allocation3], 0  ;;  %v14_v1 = vsel %vm13_vm0, %v12_v0, 0.0  ;;  %v32_v9 = vlaneseq  ;;  %v25_v13 = vld [vmem:[%s121_s0] sm:$0x3]  ;;  %s93_s16 = smov [#allocation2]  }
   0x3   :  { %15 = vadd.xlane.f32.xlu0 %v14_v1  ;;  %v26_v14 = vld [vmem:[%s121_s0 + $0x2] sm:$0x3]  ;;  %s53_s17 = sshll.u32 %s93_s16, 4  ;;  %vm45_vm2 = vcmask 9216   ;;  %s54_s17 = int_to_ptr.vmem [resolvable:$true] %s53_s17 }
   0x4   :  { %v33_v10 = vshrl.u32 %v32_v9, 7  ;;  %s71_s18 = scalar_lea.vmem %s54_s17, 32  ;;  %p76_p2 = scmp.lt.s32.totalorder %s54_s17, %s54_s17 }
   0x5   :  { %p72_p1 = scmp.ne.s32.totalorder %s54_s17, %s71_s18  ;;  %p77_p3 = scmp.lt.s32.totalorder %s71_s18, %s71_s18 }
   0x6   :  { %v34_v11 = vsub.s32 0, %v33_v10 }
   0x7   :  { %p78_p4 = por %p77_p3, %p76_p2 }
   0x8   :  { %v35_v12 = vrot.slane %v12_v0, %v34_v11 }
   0x9   :  { %p79_p5 = pnand %p78_p4, %p72_p1 }
  0x8c   :  { %v16_v2 = vpop.xlane.xlu0 %15 }
  0x8d   :  { %v17_v3 = vrot.slane %v16_v2, 4 }
  0x8f   :  { %v18_v4 = vadd.f32 %v17_v3, %v16_v2 }
  0x91   :  { %v19_v5 = vrot.slane %v18_v4, 2 }
  0x93   :  { %v20_v6 = vadd.f32 %v19_v5, %v18_v4 }
  0x95   :  { %v21_v7 = vrot.slane %v20_v6, 1 }
  0x97   :  { %v22_v8 = vadd.f32 %v21_v7, %v20_v6 }
  0x99   :  { %62 = vpush %v22_v8 }
  0xca   :  { %s63_s11 = spop %62 }
  0xcb   :  { %p24_p0 = scmp.gt.f32.partialorder %s63_s11, 0.0 }
  0xcd   :  { %s27_s12 = scalar_select %p24_p0, 1, 0 }
  0xcf   :  { %v28_v15 = vstv %s27_s12 }
  0xd0   :  { %vm29_vm1 = vcmp.eq.s32.totalorder %v28_v15, 1 }
  0xd1   :  { %v30_v16 = vsel %vm29_vm1, %v25_v13, %v26_v14 }
  0xd2   :  { %v37_v17 = vmul.f32 %v35_v12, %v30_v16 }
  0xd4   :  { %v61_v18 = vmul.f32 -1.442695, %v37_v17 }
  0xd6   :  { %65 = vpow2.f32 %v61_v18 }
  0xe3   :  { %v66_v19 = vpop.eup %65 }
  0xe4   :  { %v41_v20 = vadd.f32 1.0, %v66_v19 }
  0xe6   :  { %67 = vrcp.f32 %v41_v20 }
  0xf3   :  { %v68_v21 = vpop.eup %67 }
  0xf4   :  { %69 = vtanh.f32 %v68_v21 }
 0x101   :  { %v70_v22 = vpop.eup %69 }
 0x102   :  { %46 = vst.msk [vmem:[#allocation2] sm:$0x3] %vm45_vm2, %v70_v22 }
 0x103   :  { %82 = shalt.err (!%p79_p5)
}
 0x104   :  { %56 = dma.vmem_to_hbm [thread:$0]  %s54_s17, 32, %s123_s2, [#allocation3]  }
 0x105   :  { %91 = dma.done.wait [#allocation3], 32  }
 0x106   :  { %92 = vsyncadd [#allocation3], 4294967264 }
 0x107   :  { %60 = vsyncpa [#allocation3], 1 }

</bundles_post_ra>
